<compile_context>
chip_gen: v7x
topology: tpu7x:2x2x1
jax: 0.10.0
libtpu: 0.0.40
codegen_flags: <defaults>
</compile_context>

<pallas_src>
import functools

import jax
import jax.numpy as jnp
from jax.experimental import pallas as pl
from jax.experimental.pallas import tpu as pltpu


# --------------------------------------------------------------------------
# Fused CALayer kernel (per batch element)
# --------------------------------------------------------------------------
def _ca_kernel(x_ref, w1_ref, b1_ref, w2_ref, b2_ref, o_ref, *, inv_hw):
    # x_ref: (1, R, L) with R = H*W/P rows, L = P*C = 128 lanes (P spatial
    # positions x C channels packed along the lane axis).
    x = x_ref[0]                                            # (R, L) f32, lane-dense

    # Global average pool fused with the first 1x1 conv:
    #   gap_packed[p*C + c] = (1/HW) * sum over rows of packed slot p, channel c
    #   gap_packed @ tile(w1,(P,1)) == channel_mean @ w1   (exact)
    gap = jnp.sum(x, axis=0, keepdims=True) * inv_hw        # (1, L)
    y = jnp.dot(gap, w1_ref[...], preferred_element_type=jnp.float32)
    y = jnp.maximum(y + b1_ref[...], 0.0)                   # (1, Cr)

    # Second 1x1 conv with lane-replicated weights -> per-lane scale directly.
    y = jnp.dot(y, w2_ref[...], preferred_element_type=jnp.float32)
    y = jax.nn.sigmoid(y + b2_ref[...])                     # (1, L)

    # Channel excitation: broadcast over rows, lane-dense multiply + store.
    o_ref[0] = x * y


# --------------------------------------------------------------------------
# Wrapper: layout packing + weight packing + pallas_call
# --------------------------------------------------------------------------
def ca_layer_pallas(x_nchw, params):
    """x_nchw: (B, C, H, W) f32.  params: w1 (C,Cr), b1 (1,Cr), w2 (Cr,C), b2 (1,C).
    (w1/w2 correspond to conv_du[0].weight[:, :, 0, 0].T / conv_du[2].weight[:, :, 0, 0].T.)
    Returns (B, C, H, W) f32."""
    B, C, H, W = x_nchw.shape
    w1, b1, w2, b2 = params['w1'], params['b1'], params['w2'], params['b2']
    Cr = w1.shape[1]
    HW = H * W

    # Lane-packing factor: pack P spatial positions into one 128-wide lane row.
    P = 1
    if 128 % C == 0:
        P = 128 // C
        while P > 1 and HW % P != 0:
            P //= 2
    R = HW // P
    L = P * C

    # NCHW -> NHWC -> packed (B, R, L).  Contiguous reshape; transpose is wrapper glue.
    x = jnp.transpose(x_nchw, (0, 2, 3, 1)).reshape(B, R, L)

    # Pack the 1x1 weights so the kernel needs no in-kernel reshapes/tiles.
    w1p = jnp.tile(w1, (P, 1))            # (L, Cr)
    w2p = jnp.tile(w2, (1, P))            # (Cr, L)
    b2p = jnp.tile(b2, (1, P))            # (1, L)

    kern = functools.partial(_ca_kernel, inv_hw=1.0 / HW)
    full = lambda b: (0, 0)
    out = pl.pallas_call(
        kern,
        out_shape=jax.ShapeDtypeStruct((B, R, L), jnp.float32),
        grid=(B,),
        in_specs=[
            pl.BlockSpec((1, R, L), lambda b: (b, 0, 0)),   # x (packed)
            pl.BlockSpec((L, Cr), full),                    # w1 packed
            pl.BlockSpec((1, Cr), full),                    # b1
            pl.BlockSpec((Cr, L), full),                    # w2 packed
            pl.BlockSpec((1, L), full),                     # b2 packed
        ],
        out_specs=pl.BlockSpec((1, R, L), lambda b: (b, 0, 0)),
        compiler_params=pltpu.CompilerParams(
            dimension_semantics=("parallel",)),             # v7x: 2 TCs share the batch
    )(x, w1p, b1, w2p, b2p)

    # packed -> NHWC -> NCHW
    return jnp.transpose(out.reshape(B, H, W, C), (0, 3, 1, 2))


# --------------------------------------------------------------------------
# Pure-JAX reference (NCHW, matches the PyTorch module)
# --------------------------------------------------------------------------
def ca_layer_ref(x, p):
    y = jnp.mean(x, axis=(2, 3))                                  # GAP -> (B, C)
    y = jnp.maximum(jnp.dot(y, p['w1']) + p['b1'], 0.0)           # conv1x1 + ReLU
    y = jax.nn.sigmoid(jnp.dot(y, p['w2']) + p['b2'])             # conv1x1 + sigmoid
    return x * y[:, :, None, None]


# --------------------------------------------------------------------------
if __name__ == "__main__":
    # channel=32 with the module's default reduction=16 -> Cr=2
    B, C, H, W = 2, 32, 16, 16
    reduction = 16
    Cr = C // reduction

    key = jax.random.PRNGKey(0)
    kx, k1, k2, k3, k4 = jax.random.split(key, 5)
    x = jax.random.normal(kx, (B, C, H, W), jnp.float32)          # PyTorch NCHW layout
    params = {
        'w1': 0.1 * jax.random.normal(k1, (C, Cr), jnp.float32),  # conv_du[0] weight (transposed 1x1)
        'b1': 0.1 * jax.random.normal(k2, (1, Cr), jnp.float32),
        'w2': 0.1 * jax.random.normal(k3, (Cr, C), jnp.float32),  # conv_du[2] weight (transposed 1x1)
        'b2': 0.1 * jax.random.normal(k4, (1, C), jnp.float32),
    }

    out = jax.block_until_ready(jax.jit(ca_layer_pallas)(x, params))
    ref = jax.block_until_ready(ca_layer_ref(x, params))

    assert out.shape == (B, C, H, W)
    max_diff = float(jnp.max(jnp.abs(out - ref)))
    assert jnp.allclose(out, ref, rtol=1e-5, atol=1e-5), "max abs diff %g" % max_diff

    print("KERNEL_OK")
</pallas_src>

<mosaic_0001>
module attributes {stable_mosaic.version = 11 : i64} {
  func.func @_ca_kernel(%arg0: i32, %arg1: memref<1x64x128xf32, #tpu.memory_space<vmem>>, %arg2: memref<128x2xf32, #tpu.memory_space<vmem>>, %arg3: memref<1x2xf32, #tpu.memory_space<vmem>>, %arg4: memref<2x128xf32, #tpu.memory_space<vmem>>, %arg5: memref<1x128xf32, #tpu.memory_space<vmem>>, %arg6: memref<1x64x128xf32, #tpu.memory_space<vmem>>) attributes {dimension_semantics = [#tpu.dimension_semantics<parallel>], iteration_bounds = array<i64: 2>, scalar_prefetch = 0 : i64, scratch_operands = 0 : i64, tpu.core_type = #tpu.core_type<tc>, window_params = [{transform_indices = @transform_0, window_bounds = array<i64: 1, 64, 128>}, {pipeline_mode = #tpu.pipeline_mode<synchronous>, transform_indices = @transform_1, window_bounds = array<i64: 128, 2>}, {pipeline_mode = #tpu.pipeline_mode<synchronous>, transform_indices = @transform_2, window_bounds = array<i64: 1, 2>}, {pipeline_mode = #tpu.pipeline_mode<synchronous>, transform_indices = @transform_3, window_bounds = array<i64: 2, 128>}, {pipeline_mode = #tpu.pipeline_mode<synchronous>, transform_indices = @transform_4, window_bounds = array<i64: 1, 128>}, {transform_indices = @transform_5, window_bounds = array<i64: 1, 64, 128>}]} {
    %c0 = arith.constant 0 : index
    %c0_0 = arith.constant 0 : index
    %c0_1 = arith.constant 0 : index
    %0 = vector.load %arg1[%c0, %c0_0, %c0_1] : memref<1x64x128xf32, #tpu.memory_space<vmem>>, vector<1x64x128xf32>
    %1 = vector.shape_cast %0 : vector<1x64x128xf32> to vector<64x128xf32>
    %cst = arith.constant dense<0.000000e+00> : vector<128xf32>
    %2 = vector.multi_reduction <add>, %1, %cst [0] : vector<64x128xf32> to vector<128xf32>
    %3 = vector.shape_cast %2 : vector<128xf32> to vector<1x128xf32>
    %cst_2 = arith.constant 3.906250e-03 : f32
    %4 = vector.broadcast %cst_2 : f32 to vector<1x128xf32>
    %5 = arith.mulf %3, %4 : vector<1x128xf32>
    %c0_3 = arith.constant 0 : index
    %c0_4 = arith.constant 0 : index
    %6 = vector.load %arg2[%c0_3, %c0_4] : memref<128x2xf32, #tpu.memory_space<vmem>>, vector<128x2xf32>
    %cst_5 = arith.constant dense<0.000000e+00> : vector<1x2xf32>
    %7 = tpu.matmul %5, %6, %cst_5 {dimension_numbers = #tpu.dot_dimension_numbers<[1], [0], [0], [1], [0, 0, 1, 1], [], []>} : vector<1x128xf32>, vector<128x2xf32>, vector<1x2xf32> -> vector<1x2xf32>
    %c0_6 = arith.constant 0 : index
    %c0_7 = arith.constant 0 : index
    %8 = vector.load %arg3[%c0_6, %c0_7] : memref<1x2xf32, #tpu.memory_space<vmem>>, vector<1x2xf32>
    %9 = arith.addf %7, %8 : vector<1x2xf32>
    %cst_8 = arith.constant 0.000000e+00 : f32
    %10 = vector.broadcast %cst_8 : f32 to vector<1x2xf32>
    %11 = arith.maximumf %9, %10 : vector<1x2xf32>
    %c0_9 = arith.constant 0 : index
    %c0_10 = arith.constant 0 : index
    %12 = vector.load %arg4[%c0_9, %c0_10] : memref<2x128xf32, #tpu.memory_space<vmem>>, vector<2x128xf32>
    %cst_11 = arith.constant dense<0.000000e+00> : vector<1x128xf32>
    %13 = tpu.matmul %11, %12, %cst_11 {dimension_numbers = #tpu.dot_dimension_numbers<[1], [0], [0], [1], [0, 0, 1, 1], [], []>} : vector<1x2xf32>, vector<2x128xf32>, vector<1x128xf32> -> vector<1x128xf32>
    %c0_12 = arith.constant 0 : index
    %c0_13 = arith.constant 0 : index
    %14 = vector.load %arg5[%c0_12, %c0_13] : memref<1x128xf32, #tpu.memory_space<vmem>>, vector<1x128xf32>
    %15 = arith.addf %13, %14 : vector<1x128xf32>
    %16 = arith.negf %15 : vector<1x128xf32>
    %17 = math.exp %16 : vector<1x128xf32>
    %cst_14 = arith.constant 1.000000e+00 : f32
    %18 = vector.broadcast %cst_14 : f32 to vector<1x128xf32>
    %19 = arith.addf %18, %17 : vector<1x128xf32>
    %20 = arith.divf %18, %19 : vector<1x128xf32>
    %21 = vector.broadcast %20 : vector<1x128xf32> to vector<64x128xf32>
    %22 = arith.mulf %1, %21 : vector<64x128xf32>
    %c0_15 = arith.constant 0 : index
    %c0_16 = arith.constant 0 : index
    %c0_17 = arith.constant 0 : index
    %23 = vector.load %arg6[%c0_15, %c0_16, %c0_17] : memref<1x64x128xf32, #tpu.memory_space<vmem>>, vector<1x64x128xf32>
    %24 = vector.shape_cast %23 : vector<1x64x128xf32> to vector<64x128xf32>
    %25 = vector.shape_cast %22 : vector<64x128xf32> to vector<1x64x128xf32>
    tpu.vector_store %arg6[%c0_15, %c0_16, %c0_17], %25 {strides = array<i32>} : memref<1x64x128xf32, #tpu.memory_space<vmem>>, vector<1x64x128xf32>,
    return
  }
  func.func @transform_0(%arg0: i32) -> (i32, i32, i32) {
    %c0_i32 = arith.constant 0 : i32
    %c0_i32_0 = arith.constant 0 : i32
    %c0_i32_1 = arith.constant 0 : i32
    return %arg0, %c0_i32, %c0_i32_0 : i32, i32, i32
  }
  func.func @transform_1(%arg0: i32) -> (i32, i32) {
    %c0_i32 = arith.constant 0 : i32
    %c0_i32_0 = arith.constant 0 : i32
    %c0_i32_1 = arith.constant 0 : i32
    return %c0_i32, %c0_i32_0 : i32, i32
  }
  func.func @transform_2(%arg0: i32) -> (i32, i32) {
    %c0_i32 = arith.constant 0 : i32
    %c0_i32_0 = arith.constant 0 : i32
    %c0_i32_1 = arith.constant 0 : i32
    return %c0_i32, %c0_i32_0 : i32, i32
  }
  func.func @transform_3(%arg0: i32) -> (i32, i32) {
    %c0_i32 = arith.constant 0 : i32
    %c0_i32_0 = arith.constant 0 : i32
    %c0_i32_1 = arith.constant 0 : i32
    return %c0_i32, %c0_i32_0 : i32, i32
  }
  func.func @transform_4(%arg0: i32) -> (i32, i32) {
    %c0_i32 = arith.constant 0 : i32
    %c0_i32_0 = arith.constant 0 : i32
    %c0_i32_1 = arith.constant 0 : i32
    return %c0_i32, %c0_i32_0 : i32, i32
  }
  func.func @transform_5(%arg0: i32) -> (i32, i32, i32) {
    %c0_i32 = arith.constant 0 : i32
    %c0_i32_0 = arith.constant 0 : i32
    %c0_i32_1 = arith.constant 0 : i32
    return %arg0, %c0_i32, %c0_i32_0 : i32, i32, i32
  }
}

</mosaic_0001>

<bundles_post_ra>
// kernel: tile.24
= control target key start
LH: loop header
LB: loop body
LE: loop exit
PB: predicated region body
PF: predicated region fallthrough
CT: control target
= control target key end

     0   :  { %s29_s10 = smov 3  ;;  %s10_s11 = smov 3  ;;  %vm12_vm0 = vcmask 261120   ;;  %vm19_vm1 = vcmask 1048320   ;;  %vm26_vm2 = vcmask 785920   ;;  %vm33_vm3 = vcmask 523520   ;;  %s67_s0 = inlined_call_operand.vmem [shape: f32[2,4,32], index: 0, kind: input, shape index: {}]   ;;  %s68_s1 = inlined_call_operand.vmem [shape: f32[2,128], index: 1, kind: output, shape index: {}]  }
   0x1   :  { %v41_v0 = vld [vmem:[%s67_s0 + $0x4] sm:$0xf]  ;;  %v8_v1 = vld [vmem:[%s67_s0] sm:$0xf]  ;;  %s15_s0 = smov 3  ;;  %s22_s12 = smov 3 }
   0x2   :  { %7 = vst [vmem:[#allocation1 + $0x8] sm:$0xf] %v41_v0  ;;  %9 = vst [vmem:[#allocation1] sm:$0xf] %v8_v1  ;;  %s45_s13 = smov 96   ;;  %s46_s14 = smov 32  }
   0x3   :  { %s47_s15 = smov 64  }
   0x9   :  { %v16_v2 = vld [vmem:[#allocation1 + $0x3] ss:$8 sm:%s15_s0]   ;;  %v30_v3 = vld [vmem:[#allocation1 + $0x1] ss:$8 sm:%s29_s10]   ;;  %v11_v4 = vld [vmem:[#allocation1] ss:$8 sm:%s10_s11]  }
   0xa   :  { %17 = vrot.lane.b32.xlu0 %v16_v2, %s45_s13  ;;  %31 = vrot.lane.b32.xlu1 %v30_v3, %s46_s14  ;;  %v23_v5 = vld [vmem:[#allocation1 + $0x2] ss:$8 sm:%s22_s12]   ;;  %13 = vst.msk [vmem:[#allocation0] sm:$0x3] %vm12_vm0, %v11_v4  }
   0xe   :  { %24 = vrot.lane.b32.xlu0 %v23_v5, %s47_s15 }
  0x7c   :  { %v18_v6 = vpop.permute.xlu0 %17   ;;  %v32_v7 = vpop.permute.xlu1 %31  }
  0x7d   :  { %20 = vst.msk [vmem:[#allocation0] sm:$0x3] %vm19_vm1, %v18_v6  }
  0x80   :  { %v25_v8 = vpop.permute.xlu0 %24  }
  0x81   :  { %27 = vst.msk [vmem:[#allocation0] sm:$0x3] %vm26_vm2, %v25_v8  }
  0x82   :  { %34 = vst.msk [vmem:[#allocation0] sm:$0x3] %vm33_vm3, %v32_v7  }
  0x89   :  { %v38_v9 = vld [vmem:[#allocation0] sm:$0x3] }
  0x8a   :  { %40 = vst [vmem:[%s68_s1] sm:$0x3] %v38_v9 }

// kernel: ca_layer_pallas.1
= control target key start
LH: loop header
LB: loop body
LE: loop exit
PB: predicated region body
PF: predicated region fallthrough
CT: control target
= control target key end

     0   :  { %s651_s18 = smov 0   ;;  %s764_s0 = inlined_call_operand.vmem [shape: f32[2,64,128], index: 0, kind: input, shape index: {}]   ;;  %s765_s1 = inlined_call_operand.vmem [shape: f32[128,2], index: 1, kind: input, shape index: {}]   ;;  %s766_s2 = inlined_call_operand.vmem [shape: f32[1,2], index: 2, kind: input, shape index: {}]   ;;  %s767_s3 = inlined_call_operand.vmem [shape: f32[2,128], index: 3, kind: input, shape index: {}]   ;;  %s768_s4 = inlined_call_operand.vmem [shape: f32[1,128], index: 4, kind: input, shape index: {}]   ;;  %s769_s5 = inlined_call_operand.vmem [shape: f32[2,64,128], index: 5, kind: output, shape index: {}]  }
   0x1 LB: > { %s496_s19 = sadd.s32 4294967295, %s616_s18   ;;  %p500_p0 = scmp.ge.s32.totalorder %s616_s18, 1  ;;  %s616_s18 = sphi %s651_s18, %s15_s18  }
   0x2   : > { %p187_p1 = scmp.lt.s32.totalorder %s616_s18, 3 }
   0x4   : > { %p188_p2 = pnand %p500_p0, %p187_p1 }
   0x5   : > { %v247_v0 = vld [vmem:[%s765_s1] sm:$0xff] (!%p188_p2)  ;;  %v248_v1 = vld [vmem:[%s765_s1 + $0x8] sm:$0xff] (!%p188_p2)  ;;  %v249_v2 = vld [vmem:[%s765_s1 + $0x10] sm:$0xff] (!%p188_p2)  ;;  %v618_v3 = vmov (!%p188_p2), 0.0|0.0   ;;  %vm619_vm0 = vmmov (!%p188_p2), 0   ;;  %v620_v6 = vmov (!%p188_p2), 0.0   ;;  %v421_v61 = vlaneseq (!%p188_p2) }
   0x6   : > { %191 = sbr.rel (%p188_p2) target bundleno = 509 (0x1fd), region = 40  ;;  %571 = vmatprep.subr.bf16.mxu0 (!%p188_p2), %v618_v3  ;;  %v572_v4 = vpack.c.bf16 (!%p188_p2), %v248_v1, %v247_v0  ;;  %v250_v5 = vld [vmem:[%s765_s1 + $0x18] sm:$0xff] (!%p188_p2)  ;;  %563 = vmatprep.mubr.msk.f32.mxu0 (!%p188_p2), %vm619_vm0, %v620_v6  ;;  %p215_p3 = scmp.lt.s32.totalorder (!%p188_p2), %s496_s19, 1  ;;  %v251_v8 = vld [vmem:[%s765_s1 + $0x20] sm:$0xff] (!%p188_p2)  ;;  %v252_v9 = vld [vmem:[%s765_s1 + $0x28] sm:$0xff] (!%p188_p2)  ;;  %vm341_vm1 = vcmask (!%p188_p2), 1041408  }
   0x7   : > { %566 = vmatprep.subr.mxu1 (!%p188_p2), %v620_v6  ;;  %568 = vmatprep.mubr.msk.f32.mxu1 (!%p188_p2), %vm619_vm0, %v620_v6  ;;  %v575_v7 = vpack.c.bf16 (!%p188_p2), %v250_v5, %v249_v2  ;;  %v578_v10 = vpack.c.bf16 (!%p188_p2), %v252_v9, %v251_v8  ;;  %v253_v14 = vld [vmem:[%s765_s1 + $0x30] sm:$0xff] (!%p188_p2)  ;;  %v254_v15 = vld [vmem:[%s765_s1 + $0x38] sm:$0xff] (!%p188_p2)  ;;  %v255_v21 = vld [vmem:[%s765_s1 + $0x40] sm:$0xff] (!%p188_p2)  ;;  %vm337_vm2 = vcmask (!%p188_p2), 15360   ;;  %v422_v62 = vshrl.u32 (!%p188_p2), %v421_v61, 7 }
   0x8   : > { %573 = vmatpush3.bf16.msra.mxu0 (!%p188_p2), %v572_v4  ;;  %v581_v19 = vpack.c.bf16 (!%p188_p2), %v254_v15, %v253_v14  ;;  %v256_v22 = vld [vmem:[%s765_s1 + $0x48] sm:$0xff] (!%p188_p2)  ;;  %v257_v28 = vld [vmem:[%s765_s1 + $0x50] sm:$0xff] (!%p188_p2)  ;;  %v258_v29 = vld [vmem:[%s765_s1 + $0x58] sm:$0xff] (!%p188_p2) }
   0x9   : > { %574 = vmatprep.subr.bf16.mxu0 (!%p188_p2), %v618_v3  ;;  %v584_v26 = vpack.c.bf16 (!%p188_p2), %v256_v22, %v255_v21  ;;  %v587_v33 = vpack.c.bf16 (!%p188_p2), %v258_v29, %v257_v28  ;;  %v259_v34 = vld [vmem:[%s765_s1 + $0x60] sm:$0xff] (!%p188_p2)  ;;  %v260_v35 = vld [vmem:[%s765_s1 + $0x68] sm:$0xff] (!%p188_p2)  ;;  %v261_v39 = vld [vmem:[%s765_s1 + $0x70] sm:$0xff] (!%p188_p2)  ;;  %v423_v63 = vsub.s32 (!%p188_p2), 0, %v422_v62 }
   0xa   : > { %v590_v38 = vpack.c.bf16 (!%p188_p2), %v260_v35, %v259_v34  ;;  %v262_v40 = vld [vmem:[%s765_s1 + $0x78] sm:$0xff] (!%p188_p2)  ;;  %v335_v48 = vld [vmem:[%s767_s3] sm:$0x3] (!%p188_p2) }
   0xb   : > { %v593_v43 = vpack.c.bf16 (!%p188_p2), %v262_v40, %v261_v39  ;;  %567 = vmatpush3.msk.msra.mxu1 (!%p188_p2), %vm341_vm1, %v335_v48  ;;  %v263_v49 = vld [vmem:[%s766_s2] sm:$0x1] (!%p188_p2) }
   0xc   : > { %576 = vmatpush3.bf16.msra.mxu0 (!%p188_p2), %v575_v7  ;;  %v336_v54 = vld [vmem:[%s768_s4] sm:$0x1] (!%p188_p2) }
   0xd   : > { %s771_s19 = smov (!%p215_p3, %s496_s19), 1  ;;  %577 = vmatprep.subr.bf16.mxu0 %v618_v3 }
   0xe   : > { %s510_s7 = sshll.u32 %s771_s19, 6 }
   0xf   : > { %s219_s10 = scalar_lea.vmem %s764_s0, %s510_s7  ;;  %s224_s17 = scalar_lea.vmem %s769_s5, %s510_s7 }
  0x10   : > { %v687_v11 = vld [vmem:[%s219_s10] sm:$0xff]  ;;  %v689_v12 = vld [vmem:[%s219_s10 + $0x8] sm:$0xff]  ;;  %v691_v13 = vld [vmem:[%s219_s10 + $0x10] sm:$0xff]  ;;  %579 = vmatpush3.bf16.msra.mxu0 %v578_v10 }
  0x11   : > { %v233_v16 = vadd.f32 %v689_v12, %v687_v11  ;;  %v702_v17 = vld [vmem:[%s219_s10 + $0x18] sm:$0xff]  ;;  %v705_v20 = vld [vmem:[%s219_s10 + $0x20] sm:$0xff]  ;;  %580 = vmatprep.subr.bf16.mxu0 %v618_v3  ;;  %v715_v24 = vld [vmem:[%s219_s10 + $0x28] sm:$0xff] }
  0x12   : > { %v231_v27 = vld [vmem:[%s219_s10 + $0x30] sm:$0xff]  ;;  %v232_v31 = vld [vmem:[%s219_s10 + $0x38] sm:$0xff] }
  0x13   : > { %v234_v18 = vadd.f32 %v233_v16, %v691_v13 }
  0x14   : > { %582 = vmatpush3.bf16.msra.mxu0 %v581_v19 }
  0x15   : > { %v235_v23 = vadd.f32 %v234_v18, %v702_v17  ;;  %583 = vmatprep.subr.bf16.mxu0 %v618_v3 }
  0x17   : > { %v236_v25 = vadd.f32 %v235_v23, %v705_v20 }
  0x18   : > { %585 = vmatpush3.bf16.msra.mxu0 %v584_v26 }
  0x19   : > { %v237_v30 = vadd.f32 %v236_v25, %v715_v24  ;;  %586 = vmatprep.subr.bf16.mxu0 %v618_v3 }
  0x1b   : > { %v238_v32 = vadd.f32 %v237_v30, %v231_v27 }
  0x1c   : > { %588 = vmatpush3.bf16.msra.mxu0 %v587_v33 }
  0x1d   : > { %v239_v36 = vadd.f32 %v238_v32, %v232_v31  ;;  %589 = vmatprep.subr.bf16.mxu0 %v618_v3 }
  0x1f   : > { %v240_v37 = vrot.slane %v239_v36, 4 }
  0x20   : > { %591 = vmatpush3.bf16.msra.mxu0 %v590_v38 }
  0x21   : > { %v241_v41 = vadd.f32 %v240_v37, %v239_v36  ;;  %592 = vmatprep.subr.bf16.mxu0 %v618_v3 }
  0x23   : > { %v242_v42 = vrot.slane %v241_v41, 2 }
  0x24   : > { %594 = vmatpush3.bf16.msra.mxu0 %v593_v43 }
  0x25   : > { %v243_v44 = vadd.f32 %v242_v42, %v241_v41 }
  0x27   : > { %v244_v45 = vrot.slane %v243_v44, 1 }
  0x29   : > { %v245_v46 = vadd.f32 %v244_v45, %v243_v44 }
  0x2b   : > { %v246_v47 = vmul.f32 0.00390625, %v245_v46 }
  0x2d   : > { %564 = vmatmul.mubr.f32.vlgmr.msra.gmra.mrb[0].mxu0 %v246_v47 }
 0x100   : > { %v330_v50 = vpop.f32.mrb[0].mxu0 }
 0x101   : > { %v331_v51 = vadd.f32 %v330_v50, %v263_v49  ;;  %v565_v52 = vpop.f32.mrb[1].mxu0 }
 0x103   : > { %v334_v53 = vmax.f32 %v331_v51, 0.0 }
 0x105   : > { %569 = vmatmul.mubr.msk.f32.vlgmr.msra.gmra.mrb[0].mxu1 %vm337_vm2, %v334_v53 }
 0x1d8   : > { %v411_v55 = vpop.f32.mrb[0].mxu1 }
 0x1d9   : > { %v412_v56 = vadd.f32 %v411_v55, %v336_v54  ;;  %v570_v57 = vpop.f32.mrb[1].mxu1 }
 0x1db   : > { %v507_v58 = vmul.f32 -1.442695, %v412_v56 }
 0x1dd   : > { %606 = vpow2.f32 %v507_v58 }
 0x1e7   : > { %v607_v59 = vpop.eup %606 }
 0x1e8   : > { %v418_v60 = vadd.f32 1.0, %v607_v59 }
 0x1ea   : > { %608 = vrcp.f32 %v418_v60 }
 0x1f4   : > { %v609_v0 = vpop.eup %608 }
 0x1f5   : > { %v424_v1 = vrot.slane %v609_v0, %v423_v63 }
 0x1f7   : > { %v425_v2 = vmul.f32 %v424_v1, %v687_v11  ;;  %v426_v3 = vmul.f32 %v424_v1, %v689_v12  ;;  %v427_v4 = vmul.f32 %v424_v1, %v691_v13  ;;  %v428_v5 = vmul.f32 %v424_v1, %v702_v17 }
 0x1f8   : > { %v429_v6 = vmul.f32 %v424_v1, %v705_v20  ;;  %v430_v7 = vmul.f32 %v424_v1, %v715_v24  ;;  %v431_v8 = vmul.f32 %v424_v1, %v231_v27  ;;  %v432_v9 = vmul.f32 %v424_v1, %v232_v31 }
 0x1f9   : > { %433 = vst [vmem:[%s224_s17] sm:$0xff] %v425_v2  ;;  %434 = vst [vmem:[%s224_s17 + $0x8] sm:$0xff] %v426_v3 }
 0x1fa   : > { %435 = vst [vmem:[%s224_s17 + $0x10] sm:$0xff] %v427_v4  ;;  %436 = vst [vmem:[%s224_s17 + $0x18] sm:$0xff] %v428_v5 }
 0x1fb   : > { %437 = vst [vmem:[%s224_s17 + $0x20] sm:$0xff] %v429_v6  ;;  %438 = vst [vmem:[%s224_s17 + $0x28] sm:$0xff] %v430_v7 }
 0x1fc   : > { %439 = vst [vmem:[%s224_s17 + $0x30] sm:$0xff] %v431_v8  ;;  %440 = vst [vmem:[%s224_s17 + $0x38] sm:$0xff] %v432_v9 }
 0x1fd PF: > { %s15_s18 = sadd.s32 1, %s616_s18  }
 0x1fe   : > { %p12_p4 = scmp.ge.s32.totalorder %s15_s18, 4  }
 0x200   :  { %14 = sbr.rel (!%p12_p4) target bundleno = 1 (0x1), region = 70 }

</bundles_post_ra>
